<compile_context>
chip_gen: v5e
topology: v5e:2x2
jax: 0.10.0
libtpu: 0.0.40
codegen_flags: <defaults>
</compile_context>

<pallas_src>
import math
import functools

import jax
import jax.numpy as jnp
from jax import lax
from jax.experimental import pallas as pl
from jax.experimental.pallas import tpu as pltpu


def _attn_kernel(*refs, dropout_p):
    if dropout_p > 0.0:
        x1_ref, x2_ref, qm_ref, bits_ref, o_ref = refs
    else:
        x1_ref, x2_ref, qm_ref, o_ref = refs
        bits_ref = None

    q = x1_ref[...]          # (bb, Lq, D)
    k = x2_ref[...]          # (bb, Lk, D)   (x2 is both K and V)
    m = qm_ref[...]          # (bb, Lq, Lk)

    d = q.shape[-1]
    scale = 1.0 / math.sqrt(d)

    # Fold the softmax scale into Q (Lq*D elements instead of Lq*Lk).
    qs = q * jnp.asarray(scale, q.dtype)

    # qk = qs @ k^T, expressed as a contraction on D (no transposed copy of k).
    qk = lax.dot_general(
        qs, k,
        dimension_numbers=(((2,), (2,)), ((0,), (0,))),
        preferred_element_type=jnp.float32)          # (bb, Lq, Lk), f32
    qk = qk + m.astype(jnp.float32)

    # Numerically-stable softmax over the last dim.
    qk_max = jnp.max(qk, axis=-1, keepdims=True)
    e = jnp.exp(qk - qk_max)
    denom = jnp.sum(e, axis=-1, keepdims=True)       # (bb, Lq, 1)

    if dropout_p > 0.0:
        # torch.dropout(attn, p, train=True): keep w.p. (1-p), scale by 1/(1-p).
        # Integer-space compare; fold the 1/(1-p) scale into the denominator.
        thresh = jnp.uint32(min(int(dropout_p * (1 << 32)), (1 << 32) - 1))
        keep = bits_ref[...] >= thresh                # (bb, Lq, Lk) bool
        inv = pl.reciprocal(denom * jnp.float32(1.0 - dropout_p), approx=True)
        attn = jnp.where(keep, e * inv, jnp.float32(0.0))
    else:
        inv = pl.reciprocal(denom, approx=True)
        attn = e * inv

    # output = attn @ v, keeping v in its native dtype (f32 accumulation).
    out = lax.dot_general(
        attn.astype(k.dtype), k,
        dimension_numbers=(((2,), (1,)), ((0,), (0,))),
        preferred_element_type=jnp.float32)           # (bb, Lq, D)
    o_ref[...] = out.astype(o_ref.dtype)


def sdpa_pallas(x1, x2, qm, *, dropout_p=0.0, seed=42):
    B, Lq, D = x1.shape
    Bk, Lk, Dk = x2.shape
    assert B == Bk and D == Dk
    assert qm.shape == (B, Lq, Lk)

    # For these small shapes, collapse the whole batch into one grid step so
    # the MXU sees a single batched matmul and per-grid-step overhead is paid
    # once.  (For long sequences one would tile Lq/Lk with a flash pattern.)
    bb = B
    grid = (pl.cdiv(B, bb),)

    kernel = functools.partial(_attn_kernel, dropout_p=dropout_p)

    in_specs = [
        pl.BlockSpec((bb, Lq, D), lambda b: (b, 0, 0)),
        pl.BlockSpec((bb, Lk, D), lambda b: (b, 0, 0)),
        pl.BlockSpec((bb, Lq, Lk), lambda b: (b, 0, 0)),
    ]
    operands = [x1, x2, qm]

    bytes_accessed = 4 * (x1.size + x2.size + qm.size + B * Lq * D)
    if dropout_p > 0.0:
        # Host-side counter-based PRNG; portable across TPU and interpret mode.
        bits = jax.random.bits(jax.random.PRNGKey(seed), (B, Lq, Lk),
                               dtype=jnp.uint32)
        in_specs.append(pl.BlockSpec((bb, Lq, Lk), lambda b: (b, 0, 0)))
        operands.append(bits)
        bytes_accessed += 4 * bits.size

    cost = pl.CostEstimate(
        flops=2 * 2 * B * Lq * Lk * D,        # two matmuls
        transcendentals=B * Lq * Lk,          # exp
        bytes_accessed=bytes_accessed)

    return pl.pallas_call(
        kernel,
        out_shape=jax.ShapeDtypeStruct((B, Lq, D), x1.dtype),
        grid_spec=pltpu.PrefetchScalarGridSpec(
            num_scalar_prefetch=0,
            grid=grid,
            in_specs=in_specs,
            out_specs=pl.BlockSpec((bb, Lq, D), lambda b: (b, 0, 0)),
        ),
        compiler_params=pltpu.CompilerParams(
            dimension_semantics=("parallel",)),
        cost_estimate=cost,
    )(*operands)


def sdpa_reference(x1, x2, qm):
    # Pure-JAX reference (no dropout) for correctness check.
    d = x1.shape[-1]
    qk = jnp.einsum("bqd,bkd->bqk", x1, x2) / math.sqrt(d) + qm
    attn = jax.nn.softmax(qk, axis=-1)
    return jnp.einsum("bqk,bkd->bqd", attn, x2)


if __name__ == "__main__":
    # Small shapes consistent with the module's (B, Lq, D) / (B, Lk, D) pattern.
    B, Lq, Lk, D = 2, 8, 16, 64
    key = jax.random.PRNGKey(0)
    k1, k2, k3 = jax.random.split(key, 3)

    x1 = jax.random.normal(k1, (B, Lq, D), dtype=jnp.float32)
    x2 = jax.random.normal(k2, (B, Lk, D), dtype=jnp.float32)
    # `qm` (attention bias, undefined global in the PyTorch module): deterministic init.
    qm = 0.1 * jax.random.normal(k3, (B, Lq, Lk), dtype=jnp.float32)

    # 1) dropout_p = 0.0 path: check against pure-JAX reference.
    #    (Tolerance accounts for the approximate EUP reciprocal in softmax.)
    out_nodrop = jax.block_until_ready(sdpa_pallas(x1, x2, qm, dropout_p=0.0))
    ref = sdpa_reference(x1, x2, qm)
    assert jnp.allclose(out_nodrop, ref, atol=3e-2, rtol=2e-2), "mismatch vs reference"

    # 2) dropout_p = 0.1 path (train-mode dropout with host-generated random bits).
    out_drop = jax.block_until_ready(sdpa_pallas(x1, x2, qm, dropout_p=0.1, seed=42))
    assert out_drop.shape == (B, Lq, D)
    assert bool(jnp.all(jnp.isfinite(out_drop)))

    print("KERNEL_OK")
</pallas_src>

<mosaic_0001>
module attributes {stable_mosaic.version = 11 : i64} {
  func.func @_attn_kernel(%arg0: i32, %arg1: memref<2x8x64xf32, #tpu.memory_space<vmem>>, %arg2: memref<2x16x64xf32, #tpu.memory_space<vmem>>, %arg3: memref<2x8x16xf32, #tpu.memory_space<vmem>>, %arg4: memref<2x8x64xf32, #tpu.memory_space<vmem>>) attributes {dimension_semantics = [#tpu.dimension_semantics<parallel>], iteration_bounds = array<i64: 1>, scalar_prefetch = 0 : i64, scratch_operands = 0 : i64, tpu.core_type = #tpu.core_type<tc>, window_params = [{transform_indices = @transform_0, window_bounds = array<i64: 2, 8, 64>}, {transform_indices = @transform_1, window_bounds = array<i64: 2, 16, 64>}, {transform_indices = @transform_2, window_bounds = array<i64: 2, 8, 16>}, {transform_indices = @transform_3, window_bounds = array<i64: 2, 8, 64>}]} {
    %c0 = arith.constant 0 : index
    %c0_0 = arith.constant 0 : index
    %c0_1 = arith.constant 0 : index
    %0 = vector.load %arg1[%c0, %c0_0, %c0_1] : memref<2x8x64xf32, #tpu.memory_space<vmem>>, vector<2x8x64xf32>
    %c0_2 = arith.constant 0 : index
    %c0_3 = arith.constant 0 : index
    %c0_4 = arith.constant 0 : index
    %1 = vector.load %arg2[%c0_2, %c0_3, %c0_4] : memref<2x16x64xf32, #tpu.memory_space<vmem>>, vector<2x16x64xf32>
    %c0_5 = arith.constant 0 : index
    %c0_6 = arith.constant 0 : index
    %c0_7 = arith.constant 0 : index
    %2 = vector.load %arg3[%c0_5, %c0_6, %c0_7] : memref<2x8x16xf32, #tpu.memory_space<vmem>>, vector<2x8x16xf32>
    %cst = arith.constant 1.250000e-01 : f32
    %3 = vector.broadcast %cst : f32 to vector<2x8x64xf32>
    %4 = arith.mulf %0, %3 : vector<2x8x64xf32>
    %cst_8 = arith.constant dense<0.000000e+00> : vector<2x8x16xf32>
    %5 = tpu.matmul %4, %1, %cst_8 {dimension_numbers = #tpu.dot_dimension_numbers<[2], [2], [1], [1], [0, 0, 0, 1, 1, 1], [0], [0]>} : vector<2x8x64xf32>, vector<2x16x64xf32>, vector<2x8x16xf32> -> vector<2x8x16xf32>
    %6 = arith.addf %5, %2 : vector<2x8x16xf32>
    %cst_9 = arith.constant dense<0xFF800000> : vector<2x8xf32>
    %7 = vector.multi_reduction <maximumf>, %6, %cst_9 [2] : vector<2x8x16xf32> to vector<2x8xf32>
    %8 = vector.shape_cast %7 : vector<2x8xf32> to vector<2x8x1xf32>
    %9 = vector.broadcast %8 : vector<2x8x1xf32> to vector<2x8x16xf32>
    %10 = arith.subf %6, %9 : vector<2x8x16xf32>
    %11 = math.exp %10 : vector<2x8x16xf32>
    %cst_10 = arith.constant dense<0.000000e+00> : vector<2x8xf32>
    %12 = vector.multi_reduction <add>, %11, %cst_10 [2] : vector<2x8x16xf32> to vector<2x8xf32>
    %13 = vector.shape_cast %12 : vector<2x8xf32> to vector<2x8x1xf32>
    %14 = tpu.reciprocal %13 {approx = true} : vector<2x8x1xf32> -> vector<2x8x1xf32>
    %15 = vector.broadcast %14 : vector<2x8x1xf32> to vector<2x8x16xf32>
    %16 = arith.mulf %11, %15 : vector<2x8x16xf32>
    %cst_11 = arith.constant dense<0.000000e+00> : vector<2x8x64xf32>
    %17 = tpu.matmul %16, %1, %cst_11 {dimension_numbers = #tpu.dot_dimension_numbers<[2], [1], [1], [2], [0, 0, 0, 1, 1, 2], [0], [0]>} : vector<2x8x16xf32>, vector<2x16x64xf32>, vector<2x8x64xf32> -> vector<2x8x64xf32>
    %c0_12 = arith.constant 0 : index
    %c0_13 = arith.constant 0 : index
    %c0_14 = arith.constant 0 : index
    %18 = vector.load %arg4[%c0_12, %c0_13, %c0_14] : memref<2x8x64xf32, #tpu.memory_space<vmem>>, vector<2x8x64xf32>
    tpu.vector_store %arg4[%c0_12, %c0_13, %c0_14], %17 {strides = array<i32>} : memref<2x8x64xf32, #tpu.memory_space<vmem>>, vector<2x8x64xf32>,
    return
  }
  func.func @transform_0(%arg0: i32) -> (i32, i32, i32) {
    %c0_i32 = arith.constant 0 : i32
    %c0_i32_0 = arith.constant 0 : i32
    %c0_i32_1 = arith.constant 0 : i32
    return %arg0, %c0_i32, %c0_i32_0 : i32, i32, i32
  }
  func.func @transform_1(%arg0: i32) -> (i32, i32, i32) {
    %c0_i32 = arith.constant 0 : i32
    %c0_i32_0 = arith.constant 0 : i32
    %c0_i32_1 = arith.constant 0 : i32
    return %arg0, %c0_i32, %c0_i32_0 : i32, i32, i32
  }
  func.func @transform_2(%arg0: i32) -> (i32, i32, i32) {
    %c0_i32 = arith.constant 0 : i32
    %c0_i32_0 = arith.constant 0 : i32
    %c0_i32_1 = arith.constant 0 : i32
    return %arg0, %c0_i32, %c0_i32_0 : i32, i32, i32
  }
  func.func @transform_3(%arg0: i32) -> (i32, i32, i32) {
    %c0_i32 = arith.constant 0 : i32
    %c0_i32_0 = arith.constant 0 : i32
    %c0_i32_1 = arith.constant 0 : i32
    return %arg0, %c0_i32, %c0_i32_0 : i32, i32, i32
  }
}

</mosaic_0001>

<bundles_post_ra>
// kernel: tpu_custom_call.1
= control target key start
LH: loop header
LB: loop body
LE: loop exit
PB: predicated region body
PF: predicated region fallthrough
CT: control target
= control target key end

     0   :  { %8 = vsyncpa [#allocation3], 0  ;;  %s410_s0 = inlined_call_operand.hbm [shape: f32[2,8,64], index: 0, kind: input, shape index: {}]   ;;  %s411_s1 = inlined_call_operand.hbm [shape: f32[2,16,64], index: 1, kind: input, shape index: {}]   ;;  %s412_s2 = inlined_call_operand.hbm [shape: f32[2,8,16], index: 2, kind: input, shape index: {}]   ;;  %s413_s3 = inlined_call_operand.hbm [shape: f32[2,8,64], index: 3, kind: output, shape index: {}]  }
   0x1   :  { %9 = vsyncpa [#allocation6], 0 }
   0x2   :  { %10 = vsyncpa [#allocation4], 0  ;;  %s28_s14 = sshll.u32 %s411_s1, 4  ;;  %s346_s15 = smov [#allocation5]   ;;  %s29_s14 = int_to_ptr.hbm [resolvable:$true] %s28_s14 }
   0x3   :  { %s30_s16 = sshll.u32 %s346_s15, 4  ;;  %s15_s19 = sshll.u32 %s410_s0, 4  ;;  %s31_s16 = int_to_ptr.vmem [resolvable:$true] %s30_s16  ;;  %s16_s19 = int_to_ptr.hbm [resolvable:$true] %s15_s19 }
   0x4   :  { %s347_s20 = smov 128   ;;  %s348_s21 = smov 8  }
   0x5   :  { %36 = dma.hbm_to_vmem [thread:$0]  %s29_s14, 512, %s31_s16, [#allocation6], %s347_s20, %s347_s20, %s348_s21  }
   0x6   :  { %s349_s22 = smov [#allocation2]   ;;  %s41_s1 = sshll.u32 %s412_s2, 4  ;;  %s42_s1 = int_to_ptr.hbm [resolvable:$true] %s41_s1 }
   0x7   :  { %s17_s23 = sshll.u32 %s349_s22, 4  ;;  %s350_s0 = smov [#allocation7]   ;;  %s18_s23 = int_to_ptr.vmem [resolvable:$true] %s17_s23 }
   0x8   :  { %23 = dma.hbm_to_vmem [thread:$0]  %s16_s19, 256, %s18_s23, [#allocation3], %s347_s20, %s347_s20, %s348_s21  }
   0x9   :  { %s43_s26 = sshll.u32 %s350_s0, 4  ;;  %s44_s26 = int_to_ptr.vmem [resolvable:$true] %s43_s26 }
   0xa   :  { %49 = dma.hbm_to_vmem [thread:$0]  %s42_s1, 256, %s44_s26, [#allocation6], %s347_s20, %s347_s20, %s348_s21  }
   0xb   :  { %340 = dma.done.wait [#allocation3], 256  }
   0xc   :  { %341 = vsyncadd [#allocation3], 4294967040 }
   0xd   :  { %342 = dma.done.wait [#allocation6], 768  }
   0xe   :  { %343 = vsyncadd [#allocation6], 4294966528  ;;  %vm72_vm0 = vcmask 523264   ;;  %v65_v0 = vld [vmem:[#allocation5 + $0x8] sm:$0xff]  ;;  %v62_v1 = vld [vmem:[#allocation2] sm:$0xff]  ;;  %vm131_vm1 = vcmask 130048  }
   0xf   :  { %222 = vmatpush.xpose.msk.msra.mxu0 %vm72_vm0, %v65_v0  ;;  %v67_v2 = vld [vmem:[#allocation5 + $0x18] sm:$0xff]  ;;  %171 = vmatpush.msra.mxu2 %v65_v0  ;;  %v64_v3 = vld [vmem:[#allocation5] sm:$0xff]  ;;  %v66_v5 = vld [vmem:[#allocation5 + $0x10] sm:$0xff]  ;;  %v70_v6 = vmul.f32 0.125, %v62_v1  ;;  %s351_s2 = smov [#allocation8]   ;;  %s208_s30 = sshll.u32 %s413_s3, 4  ;;  %s209_s30 = int_to_ptr.hbm [resolvable:$true] %s208_s30 }
  0x10   :  { %225 = vmatpush.xpose.msk.msra.mxu1 %vm72_vm0, %v67_v2  ;;  %v63_v4 = vld [vmem:[#allocation2 + $0x8] sm:$0xff]  ;;  %194 = vmatpush.msra.mxu3 %v67_v2  ;;  %v68_v8 = vld [vmem:[#allocation7] sm:$0xff]  ;;  %v69_v11 = vld [vmem:[#allocation7 + $0x8] sm:$0xff]  ;;  %s206_s27 = sshll.u32 %s351_s2, 4  ;;  %s207_s27 = int_to_ptr.vmem [resolvable:$true] %s206_s27 }
  0x11   :  { %172 = vmatpush.msra.mxu2 %v64_v3  ;;  %v71_v7 = vmul.f32 0.125, %v63_v4 }
  0x12   :  { %195 = vmatpush.msra.mxu3 %v66_v5 }
  0x13   :  { %223 = vmatpush.xpose.msk.msra.mxu0 %vm72_vm0, %v64_v3 }
  0x14   :  { %226 = vmatpush.xpose.msk.msra.mxu1 %vm72_vm0, %v66_v5 }
  0x16   :  { %224 = vmatmul.msk.f32.vlgmr.msra.gmra.mxu0 %vm72_vm0, %v70_v6 }
  0x17   :  { %227 = vmatmul.msk.f32.vlgmr.msra.gmra.mxu1 %vm72_vm0, %v71_v7 }
  0x93   :  { %v99_v9 = vpop.f32.mrf.mxu0 }
  0x94   :  { %v100_v10 = vadd.f32 %v99_v9, %v68_v8  ;;  %v128_v12 = vpop.f32.mrf.mxu1 }
  0x95   :  { %v129_v14 = vadd.f32 %v128_v12, %v69_v11 }
  0x96   :  { %v132_v13 = vsel %vm131_vm1, %v100_v10, -inf }
  0x97   :  { %133 = vmax.xlane.f32.xlu0 %v132_v13  ;;  %v135_v15 = vsel %vm131_vm1, %v129_v14, -inf }
  0x9f   :  { %136 = vmax.xlane.f32.xlu0 %v135_v15 }
 0x10a   :  { %v134_v16 = vpop.xlane.xlu0 %133 }
 0x10b   :  { %v138_v17 = vsub.f32 %v100_v10, %v134_v16 }
 0x10d   :  { %v140_v18 = vmul.f32 1.442695, %v138_v17 }
 0x10f   :  { %236 = vpow2.f32 %v140_v18 }
 0x112   :  { %v137_v19 = vpop.xlane.xlu0 %136 }
 0x113   :  { %v139_v20 = vsub.f32 %v129_v14, %v137_v19 }
 0x115   :  { %v237_v21 = vpop.eup %236  ;;  %v142_v22 = vmul.f32 1.442695, %v139_v20 }
 0x116   :  { %v144_v23 = vsel %vm131_vm1, %v237_v21, 0.0 }
 0x117   :  { %238 = vpow2.f32 %v142_v22  ;;  %145 = vadd.xlane.f32.xlu1 %v144_v23 }
 0x11d   :  { %v239_v24 = vpop.eup %238 }
 0x11e   :  { %v147_v25 = vsel %vm131_vm1, %v239_v24, 0.0 }
 0x11f   :  { %148 = vadd.xlane.f32.xlu1 %v147_v25 }
 0x18a   :  { %v146_v26 = vpop.xlane.xlu1 %145 }
 0x18b   :  { %240 = vrcp.f32 %v146_v26 }
 0x191   :  { %v241_v27 = vpop.eup %240 }
 0x192   :  { %v149_v28 = vpop.xlane.xlu1 %148  ;;  %v152_v29 = vmul.f32 %v241_v27, %v237_v21 }
 0x193   :  { %242 = vrcp.f32 %v149_v28 }
 0x194   :  { %228 = vmatmul.msk.f32.vlgmr.msra.gmra.mxu2 %vm131_vm1, %v152_v29 }
 0x199   :  { %v243_v30 = vpop.eup %242 }
 0x19a   :  { %v153_v31 = vmul.f32 %v243_v30, %v239_v24 }
 0x19c   :  { %229 = vmatmul.msk.f32.vlgmr.msra.gmra.mxu3 %vm131_vm1, %v153_v31 }
 0x217   :  { %v174_v32 = vpop.f32.mrf.mxu2 }
 0x218   :  { %200 = vst.msk [vmem:[#allocation8] sm:$0xff] %vm72_vm0, %v174_v32 }
 0x21f   :  { %v197_v33 = vpop.f32.mrf.mxu3 }
 0x220   :  { %201 = vst.msk [vmem:[#allocation8 + $0x8] sm:$0xff] %vm72_vm0, %v197_v33 }
 0x221   :  { %214 = dma.vmem_to_hbm [thread:$0]  %s207_s27, 256, %s209_s30, [#allocation4], %s347_s20, %s347_s20, %s348_s21  }
 0x222   :  { %344 = dma.done.wait [#allocation4], 256  }
 0x223   :  { %345 = vsyncadd [#allocation4], 4294967040 }
 0x224   :  { %219 = vsyncpa [#allocation3], 1 }
 0x225   :  { %220 = vsyncpa [#allocation6], 1 }
 0x226   :  { %221 = vsyncpa [#allocation4], 1 }

</bundles_post_ra>
